<compile_context>
chip_gen: v6e
topology: v6e:2x2x1
jax: 0.10.0
libtpu: 0.0.40
codegen_flags: <defaults>
</compile_context>

<pallas_src>
import jax
import jax.numpy as jnp
from jax.experimental import pallas as pl
from jax.experimental.pallas import tpu as pltpu


def _round_up(x, m):
    return (x + m - 1) // m * m


def _vmem_budget_bytes(frac=0.8, fallback_cap=64 * 1024 * 1024):
    """Physical VMEM * headroom fraction; falls back to the smallest-gen (v7x) cap."""
    try:
        cap = int(pltpu.get_tpu_info().vmem_capacity_bytes)
    except Exception:
        cap = fallback_cap
    return int(cap * frac)


def _pick_batch_tile(B, block_b):
    """Sublane-aligned batch tile with a small padding fraction."""
    b8 = _round_up(B, 8)
    tb_cap = max(8, min(b8, block_b))
    n_tiles = -(-B // tb_cap)                 # ceil div
    tb = _round_up(-(-B // n_tiles), 8)       # spread rows evenly over tiles
    return tb, n_tiles * tb


# ---------------------------------------------------------------------------
# Kernels
# ---------------------------------------------------------------------------
def _mlp_resident_kernel(x_ref, w_ref, b_ref, o_ref):
    """RESIDENT plan: one grid step = one batch tile; all layers unrolled in-kernel.

    x_ref: (tb, D) bf16   w_ref: (L, D, D) bf16   b_ref: (L, 1, D) f32   o_ref: (tb, D) bf16
    """
    n_layers = w_ref.shape[0]
    act = x_ref[...]                                            # bf16 (tb, D)
    for l in range(n_layers - 1):                               # hidden layers: Linear + ReLU
        y = jnp.dot(act, w_ref[l], preferred_element_type=jnp.float32)
        y = y + b_ref[l].astype(jnp.float32)                    # (1, D) broadcasts over rows
        act = jnp.maximum(y, 0.0).astype(act.dtype)             # back to bf16 for the next MXU op
    y = jnp.dot(act, w_ref[n_layers - 1], preferred_element_type=jnp.float32)
    y = y + b_ref[n_layers - 1].astype(jnp.float32)             # last layer: no ReLU
    o_ref[...] = y.astype(o_ref.dtype)


def _mlp_streamed_kernel(x_ref, w_ref, b_ref, o_ref, act_ref):
    """STREAMED plan: one grid step = one (batch-tile, layer) pair.

    x_ref: (tb, D) bf16 (read at layer 0)      w_ref: (D, D) bf16   b_ref: (1, D) f32
    o_ref: (tb, D) bf16 (written at last layer) act_ref: (tb, D) bf16 layer-carry scratch
    """
    layer = pl.program_id(1)
    last = pl.num_programs(1) - 1

    @pl.when(layer == 0)
    def _():
        act_ref[...] = x_ref[...]

    y = jnp.dot(act_ref[...], w_ref[...], preferred_element_type=jnp.float32)
    y = y + b_ref[...].astype(jnp.float32)

    @pl.when(layer != last)                     # hidden layers only; no dead last-layer store
    def _():
        act_ref[...] = jnp.maximum(y, 0.0).astype(act_ref.dtype)

    @pl.when(layer == last)
    def _():
        o_ref[...] = y.astype(o_ref.dtype)


# ---------------------------------------------------------------------------
# Host-side wrapper
# ---------------------------------------------------------------------------
def pack_mlp_params(params, d_pad, w_dtype=jnp.bfloat16):
    """Zero-pad each layer's (d_in, d_out) weight / (d_out,) bias to d_pad and stack.

    Zero padding keeps the math exact: padded input features hit zero weight rows,
    padded output features get zero weight columns + zero bias, and ReLU(0) == 0.
    Weights in w_dtype (MXU input dtype); biases kept in f32 for the f32 epilogue.
    """
    ws, bs = [], []
    for w, b in params:
        din, dout = w.shape
        ws.append(jnp.pad(w, ((0, d_pad - din), (0, d_pad - dout))).astype(w_dtype))
        bs.append(jnp.pad(b.astype(jnp.float32), (0, d_pad - dout)).reshape(1, d_pad))
    return jnp.stack(ws), jnp.stack(bs)          # (L, D, D) w_dtype, (L, 1, D) f32


def mlp_forward(x, params, *, param_dtype=jnp.bfloat16, block_b=1024):
    """Fused MLP forward. x: (B, d_input); params: list of (w (din, dout), b (dout,))."""
    n_layers = len(params)
    B, d_in = x.shape
    d_out = params[-1][0].shape[1]
    dims = [d_in] + [w.shape[1] for (w, _) in params]
    D = _round_up(max(dims), 128)                # common lane-dense feature dim

    w_isz = jnp.dtype(param_dtype).itemsize      # MXU / streaming dtype (bf16 = 2B)
    a_isz = w_isz                                # activations streamed in the same dtype
    budget = _vmem_budget_bytes()

    tb, Bp = _pick_batch_tile(B, block_b)

    def resident_bytes(tb_):
        return (2 * n_layers * D * D * w_isz     # weight stack (assume double-buffered)
                + 2 * n_layers * 8 * D * 4       # bias stack (f32, sublane-padded)
                + 2 * 2 * tb_ * D * a_isz        # x + out double buffers
                + 4 * tb_ * D * 4)               # in-flight f32 y / activation slack

    def streamed_bytes(tb_):
        return (2 * D * D * w_isz + 2 * 8 * D * 4
                + 2 * 2 * tb_ * D * a_isz        # x + out double buffers
                + tb_ * D * a_isz                # bf16 activation scratch
                + 3 * tb_ * D * 4)               # f32 y slack

    use_resident = resident_bytes(tb) <= budget
    if not use_resident:
        while tb > 8 and streamed_bytes(tb) > budget:
            tb = max(8, _round_up(tb // 2, 8))
        Bp = _round_up(B, tb)
    n_tiles = Bp // tb

    need = resident_bytes(tb) if use_resident else streamed_bytes(tb)
    vmem_limit = int(min(budget, max(32 * 1024 * 1024, 2 * need)))

    w_stack, b_stack = pack_mlp_params(params, D, w_dtype=param_dtype)
    xp = jnp.pad(x, ((0, Bp - B), (0, D - d_in))).astype(param_dtype)

    w_reads = 1 if use_resident else n_tiles     # weight HBM streams per call
    cost = pl.CostEstimate(
        flops=2 * Bp * D * D * n_layers,
        transcendentals=0,
        bytes_accessed=(Bp * D * a_isz                       # x
                        + w_reads * n_layers * D * D * w_isz  # W
                        + w_reads * n_layers * D * 4          # b
                        + Bp * D * a_isz),                    # out
    )

    if use_resident:
        out_padded = pl.pallas_call(
            _mlp_resident_kernel,
            out_shape=jax.ShapeDtypeStruct((Bp, D), param_dtype),
            grid=(n_tiles,),
            in_specs=[
                pl.BlockSpec((tb, D), lambda i: (i, 0)),                 # x: per batch tile
                pl.BlockSpec((n_layers, D, D), lambda i: (0, 0, 0)),     # W: resident
                pl.BlockSpec((n_layers, 1, D), lambda i: (0, 0, 0)),     # b: resident
            ],
            out_specs=pl.BlockSpec((tb, D), lambda i: (i, 0)),
            compiler_params=pltpu.CompilerParams(
                dimension_semantics=("parallel",),
                vmem_limit_bytes=vmem_limit),
            cost_estimate=cost,
        )(xp, w_stack, b_stack)
    else:
        out_padded = pl.pallas_call(
            _mlp_streamed_kernel,
            out_shape=jax.ShapeDtypeStruct((Bp, D), param_dtype),
            grid=(n_tiles, n_layers),
            in_specs=[
                pl.BlockSpec((tb, D), lambda i, l: (i, 0)),              # x: ignores layer idx
                pl.BlockSpec((None, D, D), lambda i, l: (l, 0, 0)),      # W: streamed per layer
                pl.BlockSpec((None, 1, D), lambda i, l: (l, 0, 0)),      # b: streamed per layer
            ],
            out_specs=pl.BlockSpec((tb, D), lambda i, l: (i, 0)),
            scratch_shapes=[pltpu.VMEM((tb, D), param_dtype)],           # bf16 layer-carry act
            compiler_params=pltpu.CompilerParams(
                dimension_semantics=("parallel", "arbitrary"),
                vmem_limit_bytes=vmem_limit),
            cost_estimate=cost,
        )(xp, w_stack, b_stack)

    return out_padded[:B, :d_out].astype(x.dtype)


# ---------------------------------------------------------------------------
# Params init + pure-JAX reference
# ---------------------------------------------------------------------------
def init_mlp_params(key, d_input, d_out, d_hidden, n_layers, dtype=jnp.float32):
    """Deterministic params matching MLP.__init__ layer shapes.

    Mirrors init_weights intent: bias = 0, weight ~ U(-0.1, 0.1).
    Weights stored transposed (D_in, D_out) for the kernel layout.
    """
    init_range = 0.1
    dims = [d_input] + [d_hidden] * (n_layers - 1) + [d_out]
    params = []
    for i in range(n_layers):
        key, wkey = jax.random.split(key)
        w = jax.random.uniform(wkey, (dims[i], dims[i + 1]), dtype=dtype,
                               minval=-init_range, maxval=init_range)
        b = jnp.zeros((dims[i + 1],), dtype=dtype)
        params.append((w, b))
    return params


def mlp_reference(x, params, compute_dtype=jnp.float32):
    """Pure-JAX reference. With compute_dtype=bf16 it mirrors the kernel's exact
    arithmetic: bf16 matmul inputs, f32 accumulation, f32 bias epilogue, bf16
    activation carry, bf16 output store."""
    act = x.astype(jnp.float32)
    n = len(params)
    for idx, (w, b) in enumerate(params):
        y = jnp.dot(act.astype(compute_dtype), w.astype(compute_dtype),
                    preferred_element_type=jnp.float32) + b.astype(jnp.float32)
        if idx == n - 1:
            act = y.astype(compute_dtype).astype(jnp.float32)
        else:
            act = jnp.maximum(y, 0.0).astype(compute_dtype).astype(jnp.float32)
    return act


if __name__ == "__main__":
    B, d_input, d_hidden, d_out, n_layers = 8, 32, 64, 16, 3

    key = jax.random.PRNGKey(0)
    key, xkey = jax.random.split(key)
    x = jax.random.normal(xkey, (B, d_input), dtype=jnp.float32)
    params = init_mlp_params(key, d_input, d_out, d_hidden, n_layers)

    out = jax.block_until_ready(mlp_forward(x, params))
    assert out.shape == (B, d_out)

    # Exact-arithmetic mirror (bf16 MXU inputs, f32 accumulation, bf16 stores).
    ref_bf16 = mlp_reference(x, params, compute_dtype=jnp.bfloat16)
    assert jnp.allclose(out, ref_bf16, atol=1e-4, rtol=1e-4), float(
        jnp.max(jnp.abs(out - ref_bf16)))

    # Loose check against the full-f32 PyTorch-equivalent math.
    ref_f32 = mlp_reference(x, params, compute_dtype=jnp.float32)
    assert jnp.allclose(out, ref_f32, atol=2e-2, rtol=5e-2), float(
        jnp.max(jnp.abs(out - ref_f32)))

    print("KERNEL_OK")
</pallas_src>

<mosaic_0001>
module attributes {stable_mosaic.version = 11 : i64} {
  func.func @_mlp_resident_kernel(%arg0: i32, %arg1: memref<8x128xbf16, #tpu.memory_space<vmem>>, %arg2: memref<3x128x128xbf16, #tpu.memory_space<vmem>>, %arg3: memref<3x1x128xf32, #tpu.memory_space<vmem>>, %arg4: memref<8x128xbf16, #tpu.memory_space<vmem>>) attributes {dimension_semantics = [#tpu.dimension_semantics<parallel>], iteration_bounds = array<i64: 1>, scalar_prefetch = 0 : i64, scratch_operands = 0 : i64, tpu.core_type = #tpu.core_type<tc>, window_params = [{transform_indices = @transform_0, window_bounds = array<i64: 8, 128>}, {pipeline_mode = #tpu.pipeline_mode<synchronous>, transform_indices = @transform_1, window_bounds = array<i64: 3, 128, 128>}, {pipeline_mode = #tpu.pipeline_mode<synchronous>, transform_indices = @transform_2, window_bounds = array<i64: 3, 1, 128>}, {transform_indices = @transform_3, window_bounds = array<i64: 8, 128>}]} {
    %c0 = arith.constant 0 : index
    %c0_0 = arith.constant 0 : index
    %0 = vector.load %arg1[%c0, %c0_0] : memref<8x128xbf16, #tpu.memory_space<vmem>>, vector<8x128xbf16>
    %c0_1 = arith.constant 0 : index
    %c0_2 = arith.constant 0 : index
    %c0_3 = arith.constant 0 : index
    %1 = vector.load %arg2[%c0_1, %c0_2, %c0_3] : memref<3x128x128xbf16, #tpu.memory_space<vmem>>, vector<1x128x128xbf16>
    %2 = vector.shape_cast %1 : vector<1x128x128xbf16> to vector<128x128xbf16>
    %cst = arith.constant dense<0.000000e+00> : vector<8x128xf32>
    %3 = tpu.matmul %0, %2, %cst {dimension_numbers = #tpu.dot_dimension_numbers<[1], [0], [0], [1], [0, 0, 1, 1], [], []>} : vector<8x128xbf16>, vector<128x128xbf16>, vector<8x128xf32> -> vector<8x128xf32>
    %c0_4 = arith.constant 0 : index
    %c0_5 = arith.constant 0 : index
    %c0_6 = arith.constant 0 : index
    %4 = vector.load %arg3[%c0_4, %c0_5, %c0_6] : memref<3x1x128xf32, #tpu.memory_space<vmem>>, vector<1x1x128xf32>
    %5 = vector.shape_cast %4 : vector<1x1x128xf32> to vector<1x128xf32>
    %6 = vector.broadcast %5 : vector<1x128xf32> to vector<8x128xf32>
    %7 = arith.addf %3, %6 : vector<8x128xf32>
    %cst_7 = arith.constant 0.000000e+00 : f32
    %8 = vector.broadcast %cst_7 : f32 to vector<8x128xf32>
    %9 = arith.maximumf %7, %8 : vector<8x128xf32>
    %10 = arith.truncf %9 : vector<8x128xf32> to vector<8x128xbf16>
    %c1 = arith.constant 1 : index
    %c0_8 = arith.constant 0 : index
    %c0_9 = arith.constant 0 : index
    %11 = vector.load %arg2[%c1, %c0_8, %c0_9] : memref<3x128x128xbf16, #tpu.memory_space<vmem>>, vector<1x128x128xbf16>
    %12 = vector.shape_cast %11 : vector<1x128x128xbf16> to vector<128x128xbf16>
    %cst_10 = arith.constant dense<0.000000e+00> : vector<8x128xf32>
    %13 = tpu.matmul %10, %12, %cst_10 {dimension_numbers = #tpu.dot_dimension_numbers<[1], [0], [0], [1], [0, 0, 1, 1], [], []>} : vector<8x128xbf16>, vector<128x128xbf16>, vector<8x128xf32> -> vector<8x128xf32>
    %c1_11 = arith.constant 1 : index
    %c0_12 = arith.constant 0 : index
    %c0_13 = arith.constant 0 : index
    %14 = vector.load %arg3[%c1_11, %c0_12, %c0_13] : memref<3x1x128xf32, #tpu.memory_space<vmem>>, vector<1x1x128xf32>
    %15 = vector.shape_cast %14 : vector<1x1x128xf32> to vector<1x128xf32>
    %16 = vector.broadcast %15 : vector<1x128xf32> to vector<8x128xf32>
    %17 = arith.addf %13, %16 : vector<8x128xf32>
    %cst_14 = arith.constant 0.000000e+00 : f32
    %18 = vector.broadcast %cst_14 : f32 to vector<8x128xf32>
    %19 = arith.maximumf %17, %18 : vector<8x128xf32>
    %20 = arith.truncf %19 : vector<8x128xf32> to vector<8x128xbf16>
    %c2 = arith.constant 2 : index
    %c0_15 = arith.constant 0 : index
    %c0_16 = arith.constant 0 : index
    %21 = vector.load %arg2[%c2, %c0_15, %c0_16] : memref<3x128x128xbf16, #tpu.memory_space<vmem>>, vector<1x128x128xbf16>
    %22 = vector.shape_cast %21 : vector<1x128x128xbf16> to vector<128x128xbf16>
    %cst_17 = arith.constant dense<0.000000e+00> : vector<8x128xf32>
    %23 = tpu.matmul %20, %22, %cst_17 {dimension_numbers = #tpu.dot_dimension_numbers<[1], [0], [0], [1], [0, 0, 1, 1], [], []>} : vector<8x128xbf16>, vector<128x128xbf16>, vector<8x128xf32> -> vector<8x128xf32>
    %c2_18 = arith.constant 2 : index
    %c0_19 = arith.constant 0 : index
    %c0_20 = arith.constant 0 : index
    %24 = vector.load %arg3[%c2_18, %c0_19, %c0_20] : memref<3x1x128xf32, #tpu.memory_space<vmem>>, vector<1x1x128xf32>
    %25 = vector.shape_cast %24 : vector<1x1x128xf32> to vector<1x128xf32>
    %26 = vector.broadcast %25 : vector<1x128xf32> to vector<8x128xf32>
    %27 = arith.addf %23, %26 : vector<8x128xf32>
    %28 = arith.truncf %27 : vector<8x128xf32> to vector<8x128xbf16>
    %c0_21 = arith.constant 0 : index
    %c0_22 = arith.constant 0 : index
    %29 = vector.load %arg4[%c0_21, %c0_22] : memref<8x128xbf16, #tpu.memory_space<vmem>>, vector<8x128xbf16>
    tpu.vector_store %arg4[%c0_21, %c0_22], %28 {strides = array<i32>} : memref<8x128xbf16, #tpu.memory_space<vmem>>, vector<8x128xbf16>,
    return
  }
  func.func @transform_0(%arg0: i32) -> (i32, i32) {
    %c0_i32 = arith.constant 0 : i32
    %c0_i32_0 = arith.constant 0 : i32
    return %arg0, %c0_i32 : i32, i32
  }
  func.func @transform_1(%arg0: i32) -> (i32, i32, i32) {
    %c0_i32 = arith.constant 0 : i32
    %c0_i32_0 = arith.constant 0 : i32
    %c0_i32_1 = arith.constant 0 : i32
    %c0_i32_2 = arith.constant 0 : i32
    return %c0_i32, %c0_i32_0, %c0_i32_1 : i32, i32, i32
  }
  func.func @transform_2(%arg0: i32) -> (i32, i32, i32) {
    %c0_i32 = arith.constant 0 : i32
    %c0_i32_0 = arith.constant 0 : i32
    %c0_i32_1 = arith.constant 0 : i32
    %c0_i32_2 = arith.constant 0 : i32
    return %c0_i32, %c0_i32_0, %c0_i32_1 : i32, i32, i32
  }
  func.func @transform_3(%arg0: i32) -> (i32, i32) {
    %c0_i32 = arith.constant 0 : i32
    %c0_i32_0 = arith.constant 0 : i32
    return %arg0, %c0_i32 : i32, i32
  }
}

</mosaic_0001>

<bundles_post_ra>
// kernel: tpu_custom_call.1
= control target key start
LH: loop header
LB: loop body
LE: loop exit
PB: predicated region body
PF: predicated region fallthrough
CT: control target
= control target key end

     0   :  { %8 = vsyncpa [#allocation3], 0  ;;  %s690_s0 = inlined_call_operand.hbm [shape: bf16[8,128], index: 0, kind: input, shape index: {}]   ;;  %s691_s1 = inlined_call_operand.hbm [shape: bf16[3,128,128], index: 1, kind: input, shape index: {}]   ;;  %s692_s2 = inlined_call_operand.vmem [shape: f32[3,1,128], index: 2, kind: input, shape index: {}]   ;;  %s693_s3 = inlined_call_operand.hbm [shape: bf16[8,128], index: 3, kind: output, shape index: {}]  }
   0x1   :  { %9 = vsyncpa [#allocation6], 0 }
   0x2   :  { %10 = vsyncpa [#allocation4], 0  ;;  %s615_s12 = smov [#allocation2]   ;;  %s616_s14 = smov [#allocation5]  }
   0x3   :  { %s17_s13 = sshll.u32 %s615_s12, 4  ;;  %s26_s15 = sshll.u32 %s616_s14, 4  ;;  %s18_s13 = int_to_ptr.vmem [resolvable:$true] %s17_s13  ;;  %s27_s15 = int_to_ptr.vmem [resolvable:$true] %s26_s15 }
   0x4   :  { %s557_s16 = scalar_lea.vmem %s18_s13, 64  ;;  %p562_p1 = scmp.lt.s32.totalorder %s18_s13, %s18_s13 }
   0x5   :  { %p558_p0 = scmp.ne.s32.totalorder %s18_s13, %s557_s16  ;;  %p563_p2 = scmp.lt.s32.totalorder %s557_s16, %s557_s16 }
   0x7   :  { %p564_p3 = por %p563_p2, %p562_p1 }
   0x9   :  { %p565_p4 = pnand %p564_p3, %p558_p0 }
   0xb   :  { %568 = shalt.err (!%p565_p4)
}
   0xc   :  { %20 = dma.hbm_to_vmem [thread:$0]  %s690_s0, 64, %s18_s13, [#allocation3]  }
   0xd   :  { %s577_s19 = scalar_lea.vmem %s27_s15, 3072  ;;  %p582_p6 = scmp.lt.s32.totalorder %s27_s15, %s27_s15 }
   0xe   :  { %p578_p5 = scmp.ne.s32.totalorder %s27_s15, %s577_s19  ;;  %p583_p7 = scmp.lt.s32.totalorder %s577_s19, %s577_s19 }
  0x10   :  { %p584_p8 = por %p583_p7, %p582_p6 }
  0x12   :  { %p585_p9 = pnand %p584_p8, %p578_p5 }
  0x14   :  { %588 = shalt.err (!%p585_p9)
}
  0x15   :  { %s617_s20 = smov 64   ;;  %s618_s21 = smov 4  }
  0x16   :  { %32 = dma.hbm_to_vmem [thread:$0]  %s691_s1, 3072, %s27_s15, [#allocation6], %s617_s20, %s617_s20, %s618_s21  }
  0x17   :  { %609 = dma.done.wait [#allocation3], 64  }
  0x18   :  { %610 = vsyncadd [#allocation3], 4294967232 }
  0x19   :  { %611 = dma.done.wait [#allocation6], 3072  }
  0x1a   :  { %612 = vsyncadd [#allocation6], 4294964224  ;;  %v619_v0 = vmov 0.0   ;;  %vm620_vm0 = vmmov 0   ;;  %v525_v1 = vld [vmem:[#allocation5 + $0x38] sm:$0xff]   ;;  %v526_v2 = vld [vmem:[#allocation5 + $0x30] sm:$0xff]  }
  0x1b   :  { %458 = vmatprep.subr.bf16.mxu0 %v619_v0  ;;  %474 = vmatprep.mubr.msk.bf16.mxu0 %vm620_vm0, %v619_v0  ;;  %v527_v3 = vld [vmem:[#allocation5 + $0x28] sm:$0xff]   ;;  %v533_v4 = vld [vmem:[#allocation5 + $0x78] sm:$0xff]   ;;  %v528_v5 = vld [vmem:[#allocation5 + $0x20] sm:$0xff]   ;;  %s621_s28 = smov [#allocation7]  }
  0x1c   :  { %478 = vmatprep.subr.bf16.mxu1 %v619_v0  ;;  %494 = vmatprep.mubr.msk.bf16.mxu1 %vm620_vm0, %v619_v0  ;;  %v534_v6 = vld [vmem:[#allocation5 + $0x70] sm:$0xff]   ;;  %v529_v7 = vld [vmem:[#allocation5 + $0x18] sm:$0xff]   ;;  %v535_v8 = vld [vmem:[#allocation5 + $0x68] sm:$0xff]   ;;  %s392_s29 = sshll.u32 %s621_s28, 4  ;;  %s393_s29 = int_to_ptr.vmem [resolvable:$true] %s392_s29 }
  0x1d   :  { %459 = vmatpush3.bf16.msra.mxu0 %v525_v1  ;;  %479 = vmatpush3.bf16.msra.mxu1 %v533_v4  ;;  %v530_v9 = vld [vmem:[#allocation5 + $0x10] sm:$0xff]   ;;  %v536_v10 = vld [vmem:[#allocation5 + $0x60] sm:$0xff]   ;;  %v531_v11 = vld [vmem:[#allocation5 + $0x8] sm:$0xff]   ;;  %s589_s30 = scalar_lea.vmem %s393_s29, 64  ;;  %p594_p11 = scmp.lt.s32.totalorder %s393_s29, %s393_s29 }
  0x1e   :  { %460 = vmatprep.subr.bf16.mxu0 %v619_v0  ;;  %480 = vmatprep.subr.bf16.mxu1 %v619_v0  ;;  %v537_v12 = vld [vmem:[#allocation5 + $0x58] sm:$0xff]   ;;  %v532_v13 = vld [vmem:[#allocation5] sm:$0xff]   ;;  %v538_v14 = vld [vmem:[#allocation5 + $0x50] sm:$0xff]   ;;  %p590_p10 = scmp.ne.s32.totalorder %s393_s29, %s589_s30  ;;  %p595_p12 = scmp.lt.s32.totalorder %s589_s30, %s589_s30 }
  0x1f   :  { %v42_v15 = vld [vmem:[#allocation2] sm:$0xf]  ;;  %v539_v16 = vld [vmem:[#allocation5 + $0x48] sm:$0xff]   ;;  %v540_v17 = vld [vmem:[#allocation5 + $0x40] sm:$0xff]  }
  0x20   :  { %v541_v18 = vld [vmem:[#allocation5 + $0xb8] sm:$0xff]   ;;  %v542_v19 = vld [vmem:[#allocation5 + $0xb0] sm:$0xff]   ;;  %v543_v20 = vld [vmem:[#allocation5 + $0xa8] sm:$0xff]   ;;  %p596_p13 = por %p595_p12, %p594_p11 }
  0x21   :  { %461 = vmatpush3.bf16.msra.mxu0 %v526_v2  ;;  %481 = vmatpush3.bf16.msra.mxu1 %v534_v6  ;;  %v544_v21 = vld [vmem:[#allocation5 + $0xa0] sm:$0xff]   ;;  %v545_v22 = vld [vmem:[#allocation5 + $0x98] sm:$0xff]   ;;  %v546_v23 = vld [vmem:[#allocation5 + $0x90] sm:$0xff]  }
  0x22   :  { %462 = vmatprep.subr.bf16.mxu0 %v619_v0  ;;  %482 = vmatprep.subr.bf16.mxu1 %v619_v0  ;;  %v402_v24 = vld [vmem:[%s692_s2] ss:$0 sm:$0xff]  ;;  %v547_v32 = vld [vmem:[#allocation5 + $0x88] sm:$0xff]   ;;  %v548_v33 = vld [vmem:[#allocation5 + $0x80] sm:$0xff]   ;;  %p597_p0 = pnand %p596_p13, %p590_p10 }
  0x23   :  { %v412_v34 = vld [vmem:[%s692_s2 + $0x1] ss:$0 sm:$0xff]  ;;  %v422_v42 = vld [vmem:[%s692_s2 + $0x2] ss:$0 sm:$0xff] }
  0x25   :  { %463 = vmatpush3.bf16.msra.mxu0 %v527_v3  ;;  %483 = vmatpush3.bf16.msra.mxu1 %v535_v8 }
  0x26   :  { %464 = vmatprep.subr.bf16.mxu0 %v619_v0  ;;  %484 = vmatprep.subr.bf16.mxu1 %v619_v0 }
  0x29   :  { %465 = vmatpush3.bf16.msra.mxu0 %v528_v5  ;;  %485 = vmatpush3.bf16.msra.mxu1 %v536_v10 }
  0x2a   :  { %466 = vmatprep.subr.bf16.mxu0 %v619_v0  ;;  %486 = vmatprep.subr.bf16.mxu1 %v619_v0 }
  0x2d   :  { %467 = vmatpush3.bf16.msra.mxu0 %v529_v7  ;;  %487 = vmatpush3.bf16.msra.mxu1 %v537_v12 }
  0x2e   :  { %468 = vmatprep.subr.bf16.mxu0 %v619_v0  ;;  %488 = vmatprep.subr.bf16.mxu1 %v619_v0 }
  0x31   :  { %469 = vmatpush3.bf16.msra.mxu0 %v530_v9  ;;  %489 = vmatpush3.bf16.msra.mxu1 %v538_v14 }
  0x32   :  { %470 = vmatprep.subr.bf16.mxu0 %v619_v0  ;;  %490 = vmatprep.subr.bf16.mxu1 %v619_v0 }
  0x35   :  { %471 = vmatpush3.bf16.msra.mxu0 %v531_v11  ;;  %491 = vmatpush3.bf16.msra.mxu1 %v539_v16 }
  0x36   :  { %472 = vmatprep.subr.bf16.mxu0 %v619_v0  ;;  %492 = vmatprep.subr.bf16.mxu1 %v619_v0 }
  0x39   :  { %473 = vmatpush3.bf16.msra.mxu0 %v532_v13  ;;  %493 = vmatpush3.bf16.msra.mxu1 %v540_v17 }
  0x3a   :  { %498 = vmatprep.subr.bf16.mxu0 %v619_v0 }
  0x3c   :  { %475 = vmatmul.mubr.bf16.vlgmr.msra.gmra.mxu0 %v42_v15 }
  0x3d   :  { %514 = vmatprep.mubr.msk.bf16.mxu0 %vm620_vm0, %v619_v0  ;;  %499 = vmatpush3.bf16.msra.mxu0 %v541_v18 }
  0x3e   :  { %500 = vmatprep.subr.bf16.mxu0 %v619_v0 }
  0x41   :  { %501 = vmatpush3.bf16.msra.mxu0 %v542_v19 }
  0x42   :  { %502 = vmatprep.subr.bf16.mxu0 %v619_v0 }
  0x45   :  { %503 = vmatpush3.bf16.msra.mxu0 %v543_v20 }
  0x46   :  { %504 = vmatprep.subr.bf16.mxu0 %v619_v0 }
  0x49   :  { %505 = vmatpush3.bf16.msra.mxu0 %v544_v21 }
  0x4a   :  { %506 = vmatprep.subr.bf16.mxu0 %v619_v0 }
  0x4d   :  { %507 = vmatpush3.bf16.msra.mxu0 %v545_v22 }
  0x4e   :  { %508 = vmatprep.subr.bf16.mxu0 %v619_v0 }
  0x51   :  { %509 = vmatpush3.bf16.msra.mxu0 %v546_v23 }
  0x52   :  { %510 = vmatprep.subr.bf16.mxu0 %v619_v0 }
  0x55   :  { %511 = vmatpush3.bf16.msra.mxu0 %v547_v32 }
  0x56   :  { %512 = vmatprep.subr.bf16.mxu0 %v619_v0 }
  0x59   :  { %513 = vmatpush3.bf16.msra.mxu0 %v548_v33 }
  0xfc   :  { %v148_v25 = vpop.f32.mrf.mxu0 }
  0xfd   :  { %v149_v26 = vadd.f32 %v402_v24, %v148_v25 }
  0xfe   :  { %v476_v27 = vpop.f32.mrf.mxu0 }
  0xff   :  { %v154_v28 = vmax.f32 %v149_v26, 0.0 }
 0x100   :  { %v151_v29 = vpop.f32.mrf.mxu0 }
 0x101   :  { %v155_v30 = vpack.c.bf16 %v154_v28, %v154_v28 }
 0x102   :  { %v477_v31 = vpop.f32.mrf.mxu0 }
 0x103   :  { %495 = vmatmul.mubr.bf16.vlgmr.msra.gmra.mxu1 %v155_v30 }
 0x1c3   :  { %v263_v35 = vpop.f32.mrf.mxu1 }
 0x1c4   :  { %v264_v36 = vadd.f32 %v412_v34, %v263_v35 }
 0x1c5   :  { %v496_v37 = vpop.f32.mrf.mxu1 }
 0x1c6   :  { %v269_v38 = vmax.f32 %v264_v36, 0.0 }
 0x1c7   :  { %v266_v39 = vpop.f32.mrf.mxu1 }
 0x1c8   :  { %v270_v40 = vpack.c.bf16 %v269_v38, %v269_v38 }
 0x1c9   :  { %v497_v41 = vpop.f32.mrf.mxu1 }
 0x1ca   :  { %515 = vmatmul.mubr.bf16.vlgmr.msra.gmra.mxu0 %v270_v40 }
 0x28a   :  { %v378_v43 = vpop.f32.mrf.mxu0 }
 0x28b   :  { %v379_v44 = vadd.f32 %v422_v42, %v378_v43 }
 0x28c   :  { %v516_v45 = vpop.f32.mrf.mxu0 }
 0x28d   :  { %v384_v46 = vpack.c.bf16 %v379_v44, %v379_v44 }
 0x28e   :  { %v381_v47 = vpop.f32.mrf.mxu0 }
 0x28f   :  { %385 = vst [vmem:[#allocation7] sm:$0xf] %v384_v46 }
 0x290   :  { %v517_v48 = vpop.f32.mrf.mxu0 }
 0x291   :  { %600 = shalt.err (!%p597_p0)
}
 0x292   :  { %395 = dma.vmem_to_hbm [thread:$0]  %s393_s29, 64, %s693_s3, [#allocation4]  }
 0x293   :  { %613 = dma.done.wait [#allocation4], 64  }
 0x294   :  { %614 = vsyncadd [#allocation4], 4294967232 }
 0x295   :  { %399 = vsyncpa [#allocation3], 1 }
 0x296   :  { %400 = vsyncpa [#allocation6], 1 }
 0x297   :  { %401 = vsyncpa [#allocation4], 1 }

</bundles_post_ra>
